<compile_context>
chip_gen: v7x
topology: tpu7x:2x2x1
jax: 0.10.0
libtpu: 0.0.40
codegen_flags: <defaults>
</compile_context>

<pallas_src>
import functools

import jax
import jax.numpy as jnp
from jax.experimental import pallas as pl
from jax.experimental.pallas import tpu as pltpu

BN_EPS = 1e-5
LANE = 128


def _round_up(n, m):
    return ((n + m - 1) // m) * m


def _pad_to(a, shape):
    return jnp.pad(a, [(0, s - d) for d, s in zip(a.shape, shape)])


def link_classifier_kernel(x1_ref, x2_ref, w1a_ref, w1b_ref, b1_ref,
                           w2_ref, b2_ref, out_ref):
    # BN already folded into w1a/w1b/b1 -> two MXU dots + ReLU + small dot.
    h = jnp.dot(x1_ref[...], w1a_ref[...], preferred_element_type=jnp.float32)
    h = h + jnp.dot(x2_ref[...], w1b_ref[...], preferred_element_type=jnp.float32)
    h = jnp.maximum(h + b1_ref[...], 0.0)                       # (tn, H_pad)
    out_ref[...] = (jnp.dot(h, w2_ref[...], preferred_element_type=jnp.float32)
                    + b2_ref[...])                               # (tn, C) un-padded


@functools.partial(jax.jit, static_argnames=("tile_n",))
def link_classifier_forward(x1, x2, params, *, tile_n=4096):
    """x1, x2: (N, D/2) float32.  params: dict of f32 arrays (w1 is (D, H) = W^T)."""
    N, Dh = x1.shape
    H = params["w1"].shape[1]
    C = params["w2"].shape[1]

    # ---- BatchNorm1d training-mode stats (biased var), one pass per half ----
    # Computed per half so concat([x1, x2]) is never materialized in HBM.
    m1 = jnp.mean(x1, axis=0)
    e1 = jnp.mean(x1 * x1, axis=0)
    m2 = jnp.mean(x2, axis=0)
    e2 = jnp.mean(x2 * x2, axis=0)
    mean = jnp.concatenate([m1, m2])                             # (D,) tiny
    var = jnp.maximum(jnp.concatenate([e1, e2]) - mean * mean, 0.0)

    # ---- Fold BN into Linear(D, H) ----
    s = params["gamma"] * jax.lax.rsqrt(var + BN_EPS)            # (D,)
    t = params["beta"] - mean * s                                # (D,)
    w1f = s[:, None] * params["w1"]                              # (D, H)
    b1f = params["b1"] + t @ params["w1"]                        # (H,)

    # ---- Pad only the hidden dim to 128 (lane-dense h); output stays C-wide ----
    H_pad = _round_up(H, LANE)
    w1a = _pad_to(w1f[:Dh], (Dh, H_pad))                         # (Dh, 128)
    w1b = _pad_to(w1f[Dh:], (Dh, H_pad))                         # (Dh, 128)
    b1p = _pad_to(b1f.reshape(1, H), (1, H_pad))                 # (1, 128), zeros in pad
    w2p = _pad_to(params["w2"], (H_pad, C))                      # (128, C)
    b2p = params["b2"].reshape(1, C)                             # (1, C)

    # ---- Ragged 1-D grid over N: no input padding / extra HBM copies ----
    # Keep >=8 grid steps for large N (v7x dual-TC sharding) but cap at tile_n.
    tn = max(8, min(tile_n, _round_up(pl.cdiv(N, 8), 8)))
    grid = (pl.cdiv(N, tn),)

    out = pl.pallas_call(
        link_classifier_kernel,
        out_shape=jax.ShapeDtypeStruct((N, C), jnp.float32),
        grid=grid,
        in_specs=[
            pl.BlockSpec((tn, Dh), lambda i: (i, 0)),            # x1 tile (streamed)
            pl.BlockSpec((tn, Dh), lambda i: (i, 0)),            # x2 tile (streamed)
            pl.BlockSpec((Dh, H_pad), lambda i: (0, 0)),         # W1a' (resident)
            pl.BlockSpec((Dh, H_pad), lambda i: (0, 0)),         # W1b' (resident)
            pl.BlockSpec((1, H_pad), lambda i: (0, 0)),          # b1'  (resident)
            pl.BlockSpec((H_pad, C), lambda i: (0, 0)),          # W2   (resident)
            pl.BlockSpec((1, C), lambda i: (0, 0)),              # b2   (resident)
        ],
        out_specs=pl.BlockSpec((tn, C), lambda i: (i, 0)),       # un-padded logits
        compiler_params=pltpu.CompilerParams(
            dimension_semantics=("parallel",),
            vmem_limit_bytes=32 * 1024 * 1024),
    )(x1, x2, w1a, w1b, b1p, w2p, b2p)

    return out


def init_params(key, input_dimensionality, num_classes, hidden=20):
    """Deterministic synthetic parameters (PyTorch-Linear-style uniform init)."""
    k1, k2, k3, k4 = jax.random.split(key, 4)
    bound1 = 1.0 / jnp.sqrt(input_dimensionality)
    bound2 = 1.0 / jnp.sqrt(hidden)
    return {
        # BatchNorm1d affine params (PyTorch default init: ones / zeros)
        "gamma": jnp.ones((input_dimensionality,), jnp.float32),
        "beta": jnp.zeros((input_dimensionality,), jnp.float32),
        # Linear(D, 20): stored as (D, 20) = W^T
        "w1": jax.random.uniform(k1, (input_dimensionality, hidden),
                                 jnp.float32, -bound1, bound1),
        "b1": jax.random.uniform(k2, (hidden,), jnp.float32, -bound1, bound1),
        # Linear(20, C): stored as (20, C) = W^T
        "w2": jax.random.uniform(k3, (hidden, num_classes),
                                 jnp.float32, -bound2, bound2),
        "b2": jax.random.uniform(k4, (num_classes,), jnp.float32, -bound2, bound2),
    }


if __name__ == "__main__":
    key = jax.random.PRNGKey(0)
    kx1, kx2, kp = jax.random.split(key, 3)

    batch = 8
    d_half = 16                        # x1 and x2 each have 16 features
    input_dimensionality = 2 * d_half  # = 32 (dim of concat, as BatchNorm1d expects)
    num_classes = 5

    x1 = jax.random.normal(kx1, (batch, d_half), jnp.float32)
    x2 = jax.random.normal(kx2, (batch, d_half), jnp.float32)
    params = init_params(kp, input_dimensionality, num_classes)

    out = link_classifier_forward(x1, x2, params)
    jax.block_until_ready(out)

    # Pure-JAX reference of the original (un-folded) forward-pass math.
    x = jnp.concatenate([x1, x2], axis=1)
    mean = jnp.mean(x, axis=0, keepdims=True)
    var = jnp.mean((x - mean) ** 2, axis=0, keepdims=True)
    x_bn = (x - mean) / jnp.sqrt(var + BN_EPS) * params["gamma"] + params["beta"]
    h = jnp.maximum(x_bn @ params["w1"] + params["b1"], 0.0)
    ref = h @ params["w2"] + params["b2"]

    assert out.shape == (batch, num_classes)
    assert jnp.allclose(out, ref, atol=1e-4, rtol=1e-4)

    print("KERNEL_OK")
</pallas_src>

<mosaic_0001>
module attributes {stable_mosaic.version = 11 : i64} {
  func.func @link_classifier_kernel(%arg0: i32, %arg1: memref<8x16xf32, #tpu.memory_space<vmem>>, %arg2: memref<8x16xf32, #tpu.memory_space<vmem>>, %arg3: memref<16x128xf32, #tpu.memory_space<vmem>>, %arg4: memref<16x128xf32, #tpu.memory_space<vmem>>, %arg5: memref<1x128xf32, #tpu.memory_space<vmem>>, %arg6: memref<128x5xf32, #tpu.memory_space<vmem>>, %arg7: memref<1x5xf32, #tpu.memory_space<vmem>>, %arg8: memref<8x5xf32, #tpu.memory_space<vmem>>) attributes {dimension_semantics = [#tpu.dimension_semantics<parallel>], iteration_bounds = array<i64: 1>, scalar_prefetch = 0 : i64, scratch_operands = 0 : i64, tpu.core_type = #tpu.core_type<tc>, window_params = [{transform_indices = @transform_0, window_bounds = array<i64: 8, 16>}, {transform_indices = @transform_1, window_bounds = array<i64: 8, 16>}, {pipeline_mode = #tpu.pipeline_mode<synchronous>, transform_indices = @transform_2, window_bounds = array<i64: 16, 128>}, {pipeline_mode = #tpu.pipeline_mode<synchronous>, transform_indices = @transform_3, window_bounds = array<i64: 16, 128>}, {pipeline_mode = #tpu.pipeline_mode<synchronous>, transform_indices = @transform_4, window_bounds = array<i64: 1, 128>}, {pipeline_mode = #tpu.pipeline_mode<synchronous>, transform_indices = @transform_5, window_bounds = array<i64: 128, 5>}, {pipeline_mode = #tpu.pipeline_mode<synchronous>, transform_indices = @transform_6, window_bounds = array<i64: 1, 5>}, {transform_indices = @transform_7, window_bounds = array<i64: 8, 5>}]} {
    %c0 = arith.constant 0 : index
    %c0_0 = arith.constant 0 : index
    %0 = vector.load %arg1[%c0, %c0_0] : memref<8x16xf32, #tpu.memory_space<vmem>>, vector<8x16xf32>
    %c0_1 = arith.constant 0 : index
    %c0_2 = arith.constant 0 : index
    %1 = vector.load %arg3[%c0_1, %c0_2] : memref<16x128xf32, #tpu.memory_space<vmem>>, vector<16x128xf32>
    %cst = arith.constant dense<0.000000e+00> : vector<8x128xf32>
    %2 = tpu.matmul %0, %1, %cst {dimension_numbers = #tpu.dot_dimension_numbers<[1], [0], [0], [1], [0, 0, 1, 1], [], []>} : vector<8x16xf32>, vector<16x128xf32>, vector<8x128xf32> -> vector<8x128xf32>
    %c0_3 = arith.constant 0 : index
    %c0_4 = arith.constant 0 : index
    %3 = vector.load %arg2[%c0_3, %c0_4] : memref<8x16xf32, #tpu.memory_space<vmem>>, vector<8x16xf32>
    %c0_5 = arith.constant 0 : index
    %c0_6 = arith.constant 0 : index
    %4 = vector.load %arg4[%c0_5, %c0_6] : memref<16x128xf32, #tpu.memory_space<vmem>>, vector<16x128xf32>
    %cst_7 = arith.constant dense<0.000000e+00> : vector<8x128xf32>
    %5 = tpu.matmul %3, %4, %cst_7 {dimension_numbers = #tpu.dot_dimension_numbers<[1], [0], [0], [1], [0, 0, 1, 1], [], []>} : vector<8x16xf32>, vector<16x128xf32>, vector<8x128xf32> -> vector<8x128xf32>
    %6 = arith.addf %2, %5 : vector<8x128xf32>
    %c0_8 = arith.constant 0 : index
    %c0_9 = arith.constant 0 : index
    %7 = vector.load %arg5[%c0_8, %c0_9] : memref<1x128xf32, #tpu.memory_space<vmem>>, vector<1x128xf32>
    %8 = vector.broadcast %7 : vector<1x128xf32> to vector<8x128xf32>
    %9 = arith.addf %6, %8 : vector<8x128xf32>
    %cst_10 = arith.constant 0.000000e+00 : f32
    %10 = vector.broadcast %cst_10 : f32 to vector<8x128xf32>
    %11 = arith.maximumf %9, %10 : vector<8x128xf32>
    %c0_11 = arith.constant 0 : index
    %c0_12 = arith.constant 0 : index
    %12 = vector.load %arg6[%c0_11, %c0_12] : memref<128x5xf32, #tpu.memory_space<vmem>>, vector<128x5xf32>
    %cst_13 = arith.constant dense<0.000000e+00> : vector<8x5xf32>
    %13 = tpu.matmul %11, %12, %cst_13 {dimension_numbers = #tpu.dot_dimension_numbers<[1], [0], [0], [1], [0, 0, 1, 1], [], []>} : vector<8x128xf32>, vector<128x5xf32>, vector<8x5xf32> -> vector<8x5xf32>
    %c0_14 = arith.constant 0 : index
    %c0_15 = arith.constant 0 : index
    %14 = vector.load %arg7[%c0_14, %c0_15] : memref<1x5xf32, #tpu.memory_space<vmem>>, vector<1x5xf32>
    %15 = vector.broadcast %14 : vector<1x5xf32> to vector<8x5xf32>
    %16 = arith.addf %13, %15 : vector<8x5xf32>
    %c0_16 = arith.constant 0 : index
    %c0_17 = arith.constant 0 : index
    %17 = vector.load %arg8[%c0_16, %c0_17] : memref<8x5xf32, #tpu.memory_space<vmem>>, vector<8x5xf32>
    tpu.vector_store %arg8[%c0_16, %c0_17], %16 {strides = array<i32>} : memref<8x5xf32, #tpu.memory_space<vmem>>, vector<8x5xf32>,
    return
  }
  func.func @transform_0(%arg0: i32) -> (i32, i32) {
    %c0_i32 = arith.constant 0 : i32
    %c0_i32_0 = arith.constant 0 : i32
    return %arg0, %c0_i32 : i32, i32
  }
  func.func @transform_1(%arg0: i32) -> (i32, i32) {
    %c0_i32 = arith.constant 0 : i32
    %c0_i32_0 = arith.constant 0 : i32
    return %arg0, %c0_i32 : i32, i32
  }
  func.func @transform_2(%arg0: i32) -> (i32, i32) {
    %c0_i32 = arith.constant 0 : i32
    %c0_i32_0 = arith.constant 0 : i32
    %c0_i32_1 = arith.constant 0 : i32
    return %c0_i32, %c0_i32_0 : i32, i32
  }
  func.func @transform_3(%arg0: i32) -> (i32, i32) {
    %c0_i32 = arith.constant 0 : i32
    %c0_i32_0 = arith.constant 0 : i32
    %c0_i32_1 = arith.constant 0 : i32
    return %c0_i32, %c0_i32_0 : i32, i32
  }
  func.func @transform_4(%arg0: i32) -> (i32, i32) {
    %c0_i32 = arith.constant 0 : i32
    %c0_i32_0 = arith.constant 0 : i32
    %c0_i32_1 = arith.constant 0 : i32
    return %c0_i32, %c0_i32_0 : i32, i32
  }
  func.func @transform_5(%arg0: i32) -> (i32, i32) {
    %c0_i32 = arith.constant 0 : i32
    %c0_i32_0 = arith.constant 0 : i32
    %c0_i32_1 = arith.constant 0 : i32
    return %c0_i32, %c0_i32_0 : i32, i32
  }
  func.func @transform_6(%arg0: i32) -> (i32, i32) {
    %c0_i32 = arith.constant 0 : i32
    %c0_i32_0 = arith.constant 0 : i32
    %c0_i32_1 = arith.constant 0 : i32
    return %c0_i32, %c0_i32_0 : i32, i32
  }
  func.func @transform_7(%arg0: i32) -> (i32, i32) {
    %c0_i32 = arith.constant 0 : i32
    %c0_i32_0 = arith.constant 0 : i32
    return %arg0, %c0_i32 : i32, i32
  }
}

</mosaic_0001>

<bundles_post_ra>
// kernel: link_classifier_forward.1
= control target key start
LH: loop header
LB: loop body
LE: loop exit
PB: predicated region body
PF: predicated region fallthrough
CT: control target
= control target key end

     0   :  { %v432_v2 = vmov 0.0|0.0   ;;  %vm433_vm0 = vmmov 0   ;;  %v434_v4 = vmov 0.0   ;;  %vm33_vm1 = vcmask 130048   ;;  %s565_s0 = inlined_call_operand.vmem [shape: f32[8,16], index: 0, kind: input, shape index: {}]   ;;  %s566_s1 = inlined_call_operand.vmem [shape: f32[8,16], index: 1, kind: input, shape index: {}]   ;;  %s567_s2 = inlined_call_operand.vmem [shape: f32[16,128], index: 2, kind: input, shape index: {}]   ;;  %s568_s3 = inlined_call_operand.vmem [shape: f32[16,128], index: 3, kind: input, shape index: {}]   ;;  %s569_s4 = inlined_call_operand.vmem [shape: f32[1,128], index: 4, kind: input, shape index: {}]   ;;  %s570_s5 = inlined_call_operand.vmem [shape: f32[128,5], index: 5, kind: input, shape index: {}]   ;;  %s571_s6 = inlined_call_operand.vmem [shape: f32[1,5], index: 6, kind: input, shape index: {}]   ;;  %s572_s7 = inlined_call_operand.hbm [shape: f32[8,5], index: 7, kind: output, shape index: {}]  }
   0x1   :  { %v31_v0 = vld [vmem:[%s568_s3] sm:$0xff]  ;;  %v32_v1 = vld [vmem:[%s568_s3 + $0x8] sm:$0xff]  ;;  %374 = vmatprep.subr.bf16.mxu1 %v432_v2  ;;  %329 = vmatprep.mubr.msk.f32.mxu1 %vm433_vm0, %v434_v4  ;;  %v191_v9 = vld [vmem:[%s570_s5 + $0x10] sm:$0xff] }
   0x2   :  { %v375_v3 = vpack.c.bf16 %v32_v1, %v31_v0  ;;  %v28_v5 = vld [vmem:[%s567_s2] sm:$0xff]  ;;  %v29_v6 = vld [vmem:[%s567_s2 + $0x8] sm:$0xff]  ;;  %380 = vmatprep.subr.bf16.mxu0 %v432_v2  ;;  %371 = vmatprep.mubr.msk.f32.mxu0 %vm433_vm0, %v434_v4  ;;  %v192_v13 = vld [vmem:[%s570_s5 + $0x18] sm:$0xff] }
   0x3   :  { %v189_v7 = vld [vmem:[%s570_s5] sm:$0xff]  ;;  %v190_v8 = vld [vmem:[%s570_s5 + $0x8] sm:$0xff]  ;;  %v378_v11 = vpack.c.bf16 %v29_v6, %v28_v5  ;;  %v384_v14 = vpack.c.bf16 %v192_v13, %v191_v9 }
   0x4   :  { %376 = vmatpush3.bf16.msra.mxu1 %v375_v3  ;;  %v30_v10 = vld [vmem:[%s566_s1] sm:$0xff]  ;;  %v381_v12 = vpack.c.bf16 %v190_v8, %v189_v7 }
   0x5   :  { %377 = vmatprep.subr.bf16.mxu1 %v432_v2 }
   0x6   :  { %382 = vmatpush3.bf16.msra.mxu0 %v381_v12 }
   0x7   :  { %12 = vsyncpa [#allocation3], 0  ;;  %330 = vmatmul.mubr.msk.f32.vlgmr.msra.gmra.mrb[0].mxu1 %vm33_vm1, %v30_v10  ;;  %383 = vmatprep.subr.bf16.mxu0 %v432_v2  ;;  %v193_v15 = vld [vmem:[%s570_s5 + $0x20] sm:$0xff]  ;;  %v194_v16 = vld [vmem:[%s570_s5 + $0x28] sm:$0xff]  ;;  %s435_s1 = smov [#allocation2]   ;;  %vm282_vm2 = vcmask 39936  }
   0x8   :  { %379 = vmatpush3.bf16.msra.mxu1 %v378_v11  ;;  %336 = vmatprep.mubr.msk.f32.mxu1 %vm433_vm0, %v434_v4  ;;  %v27_v17 = vld [vmem:[%s565_s0] sm:$0xff]  ;;  %v387_v18 = vpack.c.bf16 %v194_v16, %v193_v15  ;;  %v195_v19 = vld [vmem:[%s570_s5 + $0x30] sm:$0xff]  ;;  %v196_v20 = vld [vmem:[%s570_s5 + $0x38] sm:$0xff] }
   0x9   :  { %v390_v21 = vpack.c.bf16 %v196_v20, %v195_v19  ;;  %v197_v22 = vld [vmem:[%s570_s5 + $0x40] sm:$0xff]  ;;  %v198_v23 = vld [vmem:[%s570_s5 + $0x48] sm:$0xff]  ;;  %v199_v25 = vld [vmem:[%s570_s5 + $0x50] sm:$0xff] }
   0xa   :  { %385 = vmatpush3.bf16.msra.mxu0 %v384_v14  ;;  %v393_v24 = vpack.c.bf16 %v198_v23, %v197_v22  ;;  %v200_v26 = vld [vmem:[%s570_s5 + $0x58] sm:$0xff]  ;;  %v201_v28 = vld [vmem:[%s570_s5 + $0x60] sm:$0xff]  ;;  %v202_v29 = vld [vmem:[%s570_s5 + $0x68] sm:$0xff] }
   0xb   :  { %337 = vmatmul.mubr.msk.f32.vlgmr.msra.gmra.mrb[2].mxu1 %vm33_vm1, %v27_v17  ;;  %386 = vmatprep.subr.bf16.mxu0 %v432_v2  ;;  %v396_v27 = vpack.c.bf16 %v200_v26, %v199_v25  ;;  %v399_v30 = vpack.c.bf16 %v202_v29, %v201_v28  ;;  %v203_v31 = vld [vmem:[%s570_s5 + $0x70] sm:$0xff]  ;;  %v204_v32 = vld [vmem:[%s570_s5 + $0x78] sm:$0xff]  ;;  %v300_v37 = vld [vmem:[%s569_s4] ss:$0 sm:$0xff]  ;;  %s290_s5 = sshll.u32 %s435_s1, 4  ;;  %s291_s5 = int_to_ptr.vmem [resolvable:$true] %s290_s5 }
   0xc   :  { %v402_v33 = vpack.c.bf16 %v204_v32, %v203_v31  ;;  %v301_v42 = vld [vmem:[%s571_s6] ss:$0 sm:$0xff]  ;;  %s408_s20 = scalar_lea.vmem %s291_s5, 128  ;;  %p413_p1 = scmp.lt.s32.totalorder %s291_s5, %s291_s5 }
   0xd   :  { %p409_p0 = scmp.ne.s32.totalorder %s291_s5, %s408_s20  ;;  %p414_p2 = scmp.lt.s32.totalorder %s408_s20, %s408_s20 }
   0xe   :  { %388 = vmatpush3.bf16.msra.mxu0 %v387_v18 }
   0xf   :  { %389 = vmatprep.subr.bf16.mxu0 %v432_v2  ;;  %p415_p3 = por %p414_p2, %p413_p1 }
  0x11   :  { %p416_p4 = pnand %p415_p3, %p409_p0 }
  0x12   :  { %391 = vmatpush3.bf16.msra.mxu0 %v390_v21 }
  0x13   :  { %392 = vmatprep.subr.bf16.mxu0 %v432_v2 }
  0x16   :  { %394 = vmatpush3.bf16.msra.mxu0 %v393_v24 }
  0x17   :  { %395 = vmatprep.subr.bf16.mxu0 %v432_v2 }
  0x1a   :  { %397 = vmatpush3.bf16.msra.mxu0 %v396_v27 }
  0x1b   :  { %398 = vmatprep.subr.bf16.mxu0 %v432_v2 }
  0x1e   :  { %400 = vmatpush3.bf16.msra.mxu0 %v399_v30 }
  0x1f   :  { %401 = vmatprep.subr.bf16.mxu0 %v432_v2 }
  0x22   :  { %403 = vmatpush3.bf16.msra.mxu0 %v402_v33 }
  0xda   :  { %v103_v34 = vpop.f32.mrb[0].mxu1 }
  0xdb   :  { %v331_v35 = vpop.f32.mrb[1].mxu1 }
  0xde   :  { %v176_v36 = vpop.f32.mrb[2].mxu1 }
  0xdf   :  { %v177_v38 = vadd.f32 %v176_v36, %v103_v34  ;;  %v338_v39 = vpop.f32.mrb[3].mxu1 }
  0xe1   :  { %v187_v40 = vadd.f32 %v300_v37, %v177_v38 }
  0xe3   :  { %v188_v41 = vmax.f32 %v187_v40, 0.0 }
  0xe5   :  { %372 = vmatmul.mubr.f32.vlgmr.msra.gmra.mrb[0].mxu0 %v188_v41 }
 0x1b8   :  { %v278_v43 = vpop.f32.mrb[0].mxu0 }
 0x1b9   :  { %v279_v44 = vadd.f32 %v301_v42, %v278_v43  ;;  %v373_v45 = vpop.f32.mrb[1].mxu0 }
 0x1bb   :  { %283 = vst.msk [vmem:[#allocation2] sm:$0xff] %vm282_vm2, %v279_v44 }
 0x1bc   :  { %419 = shalt.err (!%p416_p4)
}
 0x1bd   :  { %s420_s22 = scalar_lea.hbm %s572_s7, 128 }
 0x1be   :  { %p421_p5 = scmp.ne.s32.totalorder %s572_s7, %s420_s22  ;;  %p424_p6 = scmp.lt.u32.totalorder %s420_s22, %s572_s7 }
 0x1c0   :  { %p426_p7 = pnand %p424_p6, %p421_p5 }
 0x1c2   :  { %429 = shalt.err (!%p426_p7)
}
 0x1c3   :  { %293 = dma.vmem_to_hbm [thread:$0]  %s291_s5, 128, %s572_s7, [#allocation3]  }
 0x1c4   :  { %430 = dma.done.wait [#allocation3], 128  }
 0x1c5   :  { %431 = vsyncadd [#allocation3], 4294967168 }
 0x1c6   :  { %297 = vsyncpa [#allocation3], 1 }

</bundles_post_ra>
